<compile_context>
chip_gen: v7x
topology: tpu7x:2x2x1
jax: 0.10.0
libtpu: 0.0.40
codegen_flags: <defaults>
</compile_context>

<pallas_src>
import jax
import jax.numpy as jnp
from jax.experimental import pallas as pl
from jax.experimental.pallas import tpu as pltpu


def _round_up(x, m):
    return (x + m - 1) // m * m


# ---------------------------------------------------------------------------
# Kernel 1: per-node projection  h = x @ W  and attention logits e_dst, e_src.
# Grid over dst-row tiles ("parallel").
# ---------------------------------------------------------------------------
def _proj_kernel(x_ref, w_ref, attc_ref, h_ref, ed_ref, es_ref):
    # MXU matmul: bf16 inputs, f32 accumulation.
    h = jnp.dot(x_ref[...], w_ref[...], preferred_element_type=jnp.float32)
    h_bf = h.astype(jnp.bfloat16)
    h_ref[...] = h_bf
    # Fold both attention logits into one tiny MXU op: [tm,H] @ [H,2].
    e = jnp.dot(h_bf, attc_ref[...], preferred_element_type=jnp.float32)
    ed_ref[...] = e[:, 0:1]   # e_dst
    es_ref[...] = e[:, 1:2]   # e_src


def _project(x_bf16, w_bf16, attc_bf16, tm, vmem_limit):
    n_pad, f_in = x_bf16.shape
    h_out = w_bf16.shape[1]
    return pl.pallas_call(
        _proj_kernel,
        out_shape=(
            jax.ShapeDtypeStruct((n_pad, h_out), jnp.bfloat16),
            jax.ShapeDtypeStruct((n_pad, 1), jnp.float32),
            jax.ShapeDtypeStruct((n_pad, 1), jnp.float32),
        ),
        grid=(n_pad // tm,),
        in_specs=[
            pl.BlockSpec((tm, f_in), lambda i: (i, 0)),     # x rows
            pl.BlockSpec((f_in, h_out), lambda i: (0, 0)),  # W (resident)
            pl.BlockSpec((h_out, 2), lambda i: (0, 0)),     # [att_dst | att_src]
        ],
        out_specs=(
            pl.BlockSpec((tm, h_out), lambda i: (i, 0)),
            pl.BlockSpec((tm, 1), lambda i: (i, 0)),
            pl.BlockSpec((tm, 1), lambda i: (i, 0)),
        ),
        compiler_params=pltpu.CompilerParams(
            dimension_semantics=("parallel",),
            vmem_limit_bytes=vmem_limit),
    )(x_bf16, w_bf16, attc_bf16)


# ---------------------------------------------------------------------------
# Kernel 2: flash-style masked-softmax aggregation.
# Grid = (dst_tiles, src_tiles); src axis last ("arbitrary"), dst "parallel".
# ---------------------------------------------------------------------------
def _attn_kernel(ed_ref, es_ref, adj_ref, h_ref, bias_ref, out_ref,
                 m_sc, l_sc, acc_sc):
    k = pl.program_id(1)

    @pl.when(k == 0)
    def _():
        m_sc[...] = jnp.full_like(m_sc, -1e30)
        l_sc[...] = jnp.zeros_like(l_sc)
        acc_sc[...] = jnp.zeros_like(acc_sc)

    # Attention scores for this (dst_tile, src_tile). All N^2 elementwise math
    # in f32 (v5e has no bf16 VPU/EUP datapath); int8 adjacency -> mask here.
    s = ed_ref[...] + es_ref[...]                 # [tm, tk] f32
    s = jnp.where(s > 0.0, s, 0.2 * s)            # GATConv leaky_relu (0.2)
    s = jnp.where(adj_ref[...] > 0, s, -1e30)     # mask non-edges

    # Online softmax (row stats in f32).
    m_prev = m_sc[...]
    m_new = jnp.maximum(m_prev, jnp.max(s, axis=-1, keepdims=True))
    scale = jnp.exp(m_prev - m_new)
    p = jnp.exp(s - m_new)
    l_sc[...] = scale * l_sc[...] + jnp.sum(p, axis=-1, keepdims=True)
    acc_sc[...] = scale * acc_sc[...] + jnp.dot(
        p.astype(jnp.bfloat16), h_ref[...], preferred_element_type=jnp.float32)
    m_sc[...] = m_new

    @pl.when(k == pl.num_programs(1) - 1)
    def _():
        out = acc_sc[...] * pl.reciprocal(l_sc[...], approx=True) + bias_ref[...]
        # Module-level F.leaky_relu (negative_slope = 0.01).
        out_ref[...] = jnp.where(out > 0.0, out, 0.01 * out).astype(out_ref.dtype)


def _attend(e_dst, e_src_row, adj_i8, h_bf16, bias_row, tm, tk, out_dtype,
            vmem_limit):
    n_pad = adj_i8.shape[0]
    h_out = h_bf16.shape[1]
    return pl.pallas_call(
        _attn_kernel,
        out_shape=jax.ShapeDtypeStruct((n_pad, h_out), out_dtype),
        grid=(n_pad // tm, n_pad // tk),
        in_specs=[
            pl.BlockSpec((tm, 1), lambda i, k: (i, 0)),       # e_dst column
            pl.BlockSpec((1, tk), lambda i, k: (0, k)),       # e_src row (lane-dense)
            # TODO(synk): bump to pipeline_mode=pl.Buffered(3) if xprof shows
            # exposed DMA on the adjacency stream.
            pl.BlockSpec((tm, tk), lambda i, k: (i, k)),      # adjacency int8
            pl.BlockSpec((tk, h_out), lambda i, k: (k, 0)),   # h of source rows
            pl.BlockSpec((1, h_out), lambda i, k: (0, 0)),    # bias
        ],
        out_specs=pl.BlockSpec((tm, h_out), lambda i, k: (i, 0)),
        scratch_shapes=[
            pltpu.VMEM((tm, 1), jnp.float32),      # running row max
            pltpu.VMEM((tm, 1), jnp.float32),      # running denominator
            pltpu.VMEM((tm, h_out), jnp.float32),  # output accumulator
        ],
        compiler_params=pltpu.CompilerParams(
            dimension_semantics=("parallel", "arbitrary"),
            vmem_limit_bytes=vmem_limit),
    )(e_dst, e_src_row, adj_i8, h_bf16, bias_row)


# ---------------------------------------------------------------------------
# Wrapper: x = leaky_relu(conv1(x)); x = leaky_relu(conv2(x)).
# ---------------------------------------------------------------------------
def gat_forward(x, adj, params):
    (w1, as1, ad1, b1), (w2, as2, ad2, b2) = params
    n = x.shape[0]

    # Tile sizes: dst tiles >= 256 for v6e/v7x MXU, src tiles lane-dense
    # multiples of 128; small graphs collapse to a single tile.
    if n <= 256:
        n_pad = _round_up(n, 128)
        tm = tk = n_pad
    else:
        tm, tk = 256, 512
        n_pad = _round_up(n, 512)

    # Explicit VMEM budget (v5e scoped default is only 16 MiB); the per-step
    # working set at (256, 512) tiles is ~3 MiB, so this leaves ample headroom
    # on every generation incl. v7x's 64 MiB physical VMEM.
    vmem_limit = 32 * 1024 * 1024

    # Pad to tile multiples; adjacency stays int8 (4x less HBM/VMEM than a
    # precomputed f32 mask), the additive mask is built inside the kernel.
    x_p = jnp.zeros((n_pad, x.shape[1]), jnp.bfloat16)
    x_p = x_p.at[:n].set(x.astype(jnp.bfloat16))
    adj_p = jnp.zeros((n_pad, n_pad), jnp.int8)
    adj_p = adj_p.at[:n, :n].set((adj > 0).astype(jnp.int8))

    def layer(x_in_bf16, w, att_src, att_dst, bias, out_dtype):
        w_bf = w.astype(jnp.bfloat16)
        attc = jnp.concatenate(
            [att_dst.reshape(-1, 1), att_src.reshape(-1, 1)],
            axis=1).astype(jnp.bfloat16)                         # [H, 2]
        h, e_dst, e_src = _project(x_in_bf16, w_bf, attc, tm, vmem_limit)
        e_src_row = e_src.reshape(1, n_pad)                      # [1, N]
        bias_row = bias.reshape(1, -1).astype(jnp.float32)
        return _attend(e_dst, e_src_row, adj_p, h, bias_row, tm, tk,
                       out_dtype, vmem_limit)

    h1 = layer(x_p, w1, as1, ad1, b1, jnp.bfloat16)   # layer-1 output stays bf16
    out = layer(h1, w2, as2, ad2, b2, jnp.float32)
    return out[:n]


def glorot(key, shape):
    fan_in, fan_out = shape[-2], shape[-1]
    limit = (6.0 / (fan_in + fan_out)) ** 0.5
    return jax.random.uniform(key, shape, jnp.float32, -limit, limit)


if __name__ == "__main__":
    num_node_features = 10
    hidden_channels = 128    # module default; lane-dense (multiple of 128)
    N = 16                   # number of graph nodes
    E = 40                   # number of directed edges

    key = jax.random.PRNGKey(0)
    (k_x, k_src, k_dst,
     k_w1, k_as1, k_ad1,
     k_w2, k_as2, k_ad2) = jax.random.split(key, 9)

    # Node features and a deterministic random edge_index [2, E] (src, dst).
    x = jax.random.normal(k_x, (N, num_node_features), jnp.float32)
    src = jax.random.randint(k_src, (E,), 0, N)
    dst = jax.random.randint(k_dst, (E,), 0, N)

    # Dense adjacency A[dst, src] = 1, plus self loops (add_self_loops=True).
    adj = jnp.zeros((N, N), jnp.float32).at[dst, src].set(1.0)
    adj = jnp.maximum(adj, jnp.eye(N, dtype=jnp.float32))

    # Layer 1 parameters (GATConv(num_node_features, hidden), heads=1).
    w1 = glorot(k_w1, (num_node_features, hidden_channels))
    att_src1 = glorot(k_as1, (1, hidden_channels))
    att_dst1 = glorot(k_ad1, (1, hidden_channels))
    bias1 = jnp.zeros((1, hidden_channels), jnp.float32)

    # Layer 2 parameters (GATConv(hidden, hidden), heads=1).
    w2 = glorot(k_w2, (hidden_channels, hidden_channels))
    att_src2 = glorot(k_as2, (1, hidden_channels))
    att_dst2 = glorot(k_ad2, (1, hidden_channels))
    bias2 = jnp.zeros((1, hidden_channels), jnp.float32)

    params = ((w1, att_src1, att_dst1, bias1),
              (w2, att_src2, att_dst2, bias2))

    out = gat_forward(x, adj, params)
    out = jax.block_until_ready(out)

    assert out.shape == (N, hidden_channels)
    assert bool(jnp.all(jnp.isfinite(out)))
    print("KERNEL_OK")
</pallas_src>

<mosaic_0001>
module attributes {stable_mosaic.version = 11 : i64} {
  func.func @_proj_kernel(%arg0: i32, %arg1: memref<128x10xbf16, #tpu.memory_space<vmem>>, %arg2: memref<10x128xbf16, #tpu.memory_space<vmem>>, %arg3: memref<128x2xbf16, #tpu.memory_space<vmem>>, %arg4: memref<128x128xbf16, #tpu.memory_space<vmem>>, %arg5: memref<128x1xf32, #tpu.memory_space<vmem>>, %arg6: memref<128x1xf32, #tpu.memory_space<vmem>>) attributes {dimension_semantics = [#tpu.dimension_semantics<parallel>], iteration_bounds = array<i64: 1>, scalar_prefetch = 0 : i64, scratch_operands = 0 : i64, tpu.core_type = #tpu.core_type<tc>, window_params = [{transform_indices = @transform_0, window_bounds = array<i64: 128, 10>}, {pipeline_mode = #tpu.pipeline_mode<synchronous>, transform_indices = @transform_1, window_bounds = array<i64: 10, 128>}, {pipeline_mode = #tpu.pipeline_mode<synchronous>, transform_indices = @transform_2, window_bounds = array<i64: 128, 2>}, {transform_indices = @transform_3, window_bounds = array<i64: 128, 128>}, {transform_indices = @transform_4, window_bounds = array<i64: 128, 1>}, {transform_indices = @transform_5, window_bounds = array<i64: 128, 1>}]} {
    %c0 = arith.constant 0 : index
    %c0_0 = arith.constant 0 : index
    %0 = vector.load %arg1[%c0, %c0_0] : memref<128x10xbf16, #tpu.memory_space<vmem>>, vector<128x10xbf16>
    %c0_1 = arith.constant 0 : index
    %c0_2 = arith.constant 0 : index
    %1 = vector.load %arg2[%c0_1, %c0_2] : memref<10x128xbf16, #tpu.memory_space<vmem>>, vector<10x128xbf16>
    %cst = arith.constant dense<0.000000e+00> : vector<128x128xf32>
    %2 = tpu.matmul %0, %1, %cst {dimension_numbers = #tpu.dot_dimension_numbers<[1], [0], [0], [1], [0, 0, 1, 1], [], []>} : vector<128x10xbf16>, vector<10x128xbf16>, vector<128x128xf32> -> vector<128x128xf32>
    %3 = arith.truncf %2 : vector<128x128xf32> to vector<128x128xbf16>
    %c0_3 = arith.constant 0 : index
    %c0_4 = arith.constant 0 : index
    %4 = vector.load %arg4[%c0_3, %c0_4] : memref<128x128xbf16, #tpu.memory_space<vmem>>, vector<128x128xbf16>
    tpu.vector_store %arg4[%c0_3, %c0_4], %3 {strides = array<i32>} : memref<128x128xbf16, #tpu.memory_space<vmem>>, vector<128x128xbf16>,
    %c0_5 = arith.constant 0 : index
    %c0_6 = arith.constant 0 : index
    %5 = vector.load %arg3[%c0_5, %c0_6] : memref<128x2xbf16, #tpu.memory_space<vmem>>, vector<128x2xbf16>
    %cst_7 = arith.constant dense<0.000000e+00> : vector<128x2xf32>
    %6 = tpu.matmul %3, %5, %cst_7 {dimension_numbers = #tpu.dot_dimension_numbers<[1], [0], [0], [1], [0, 0, 1, 1], [], []>} : vector<128x128xbf16>, vector<128x2xbf16>, vector<128x2xf32> -> vector<128x2xf32>
    %7 = vector.extract_strided_slice %6 {offsets = [0, 0], sizes = [128, 1], strides = [1, 1]} : vector<128x2xf32> to vector<128x1xf32>
    %c0_8 = arith.constant 0 : index
    %c0_9 = arith.constant 0 : index
    %8 = vector.load %arg5[%c0_8, %c0_9] : memref<128x1xf32, #tpu.memory_space<vmem>>, vector<128x1xf32>
    tpu.vector_store %arg5[%c0_8, %c0_9], %7 {strides = array<i32>} : memref<128x1xf32, #tpu.memory_space<vmem>>, vector<128x1xf32>,
    %9 = vector.extract_strided_slice %6 {offsets = [0, 1], sizes = [128, 1], strides = [1, 1]} : vector<128x2xf32> to vector<128x1xf32>
    %c0_10 = arith.constant 0 : index
    %c0_11 = arith.constant 0 : index
    %10 = vector.load %arg6[%c0_10, %c0_11] : memref<128x1xf32, #tpu.memory_space<vmem>>, vector<128x1xf32>
    tpu.vector_store %arg6[%c0_10, %c0_11], %9 {strides = array<i32>} : memref<128x1xf32, #tpu.memory_space<vmem>>, vector<128x1xf32>,
    return
  }
  func.func @transform_0(%arg0: i32) -> (i32, i32) {
    %c0_i32 = arith.constant 0 : i32
    %c0_i32_0 = arith.constant 0 : i32
    return %arg0, %c0_i32 : i32, i32
  }
  func.func @transform_1(%arg0: i32) -> (i32, i32) {
    %c0_i32 = arith.constant 0 : i32
    %c0_i32_0 = arith.constant 0 : i32
    %c0_i32_1 = arith.constant 0 : i32
    return %c0_i32, %c0_i32_0 : i32, i32
  }
  func.func @transform_2(%arg0: i32) -> (i32, i32) {
    %c0_i32 = arith.constant 0 : i32
    %c0_i32_0 = arith.constant 0 : i32
    %c0_i32_1 = arith.constant 0 : i32
    return %c0_i32, %c0_i32_0 : i32, i32
  }
  func.func @transform_3(%arg0: i32) -> (i32, i32) {
    %c0_i32 = arith.constant 0 : i32
    %c0_i32_0 = arith.constant 0 : i32
    return %arg0, %c0_i32 : i32, i32
  }
  func.func @transform_4(%arg0: i32) -> (i32, i32) {
    %c0_i32 = arith.constant 0 : i32
    %c0_i32_0 = arith.constant 0 : i32
    return %arg0, %c0_i32 : i32, i32
  }
  func.func @transform_5(%arg0: i32) -> (i32, i32) {
    %c0_i32 = arith.constant 0 : i32
    %c0_i32_0 = arith.constant 0 : i32
    return %arg0, %c0_i32 : i32, i32
  }
}

</mosaic_0001>

<bundles_post_ra>
// kernel: tpu_custom_call.1
= control target key start
LH: loop header
LB: loop body
LE: loop exit
PB: predicated region body
PF: predicated region fallthrough
CT: control target
= control target key end

     0   :  { %vm107_vm0 = vcmask 1044480   ;;  %vm82_vm1 = vcmask 80896   ;;  %s1060_s0 = inlined_call_operand.vmem [shape: bf16[128,10], index: 0, kind: input, shape index: {}]   ;;  %s1061_s1 = inlined_call_operand.vmem [shape: bf16[10,128], index: 1, kind: input, shape index: {}]   ;;  %s1062_s2 = inlined_call_operand.vmem [shape: bf16[128,2], index: 2, kind: input, shape index: {}]   ;;  %s1063_s3 = inlined_call_operand.hbm [shape: bf16[128,128], index: 3, kind: output, shape index: {0}]   ;;  %s1064_s4 = inlined_call_operand.vmem [shape: f32[128,1], index: 4, kind: output, shape index: {1}]   ;;  %s1065_s5 = inlined_call_operand.vmem [shape: f32[128,1], index: 5, kind: output, shape index: {2}]  }
   0x1   :  { %v770_v0 = vld [vmem:[%s1061_s1] sm:$0x1f]   ;;  %v772_v3 = vld [vmem:[%s1060_s0 + $0x8] sm:$0xff]   ;;  %v773_v4 = vld [vmem:[%s1060_s0 + $0x10] sm:$0xff]  }
   0x2   :  { %v771_v1 = vld [vmem:[%s1060_s0] sm:$0xff]   ;;  %765 = vmatprep.subr.msk.bf16.mxu0 %vm107_vm0, %v770_v0  ;;  %v109_v2 = vsel %vm107_vm0, %v770_v0, 0  ;;  %v774_v5 = vld [vmem:[%s1060_s0 + $0x18] sm:$0xff]   ;;  %v780_v8 = vld [vmem:[%s1062_s2 + $0x8] sm:$0xff]  }
   0x3   :  { %700 = vmatpush3.bf16.msra.mxu0 %v109_v2  ;;  %701 = vmatprep.mubr.msk.bf16.mxu0 %vm82_vm1, %v771_v1  ;;  %v775_v6 = vld [vmem:[%s1060_s0 + $0x20] sm:$0xff]   ;;  %v781_v9 = vld [vmem:[%s1062_s2 + $0x10] sm:$0xff]  }
   0x4   :  { %v779_v7 = vld [vmem:[%s1062_s2] sm:$0xff]  }
   0x5   :  { %717 = vmatprep.subr.bf16.mxu0 %v779_v7  ;;  %749 = vmatprep.subr.bf16.mxu1 %v779_v7 }
   0x6   :  { %702 = vmatmul.mubr.msk.bf16.vlgmr.msra.gmra.mrb[0].mxu0 %vm82_vm1, %v772_v3  ;;  %757 = vmatpush3.bf16.msra.mxu1 %v779_v7 }
   0x7   :  { %705 = vmatprep.mubr.msk.bf16.mxu0 %vm82_vm1, %v773_v4  ;;  %718 = vmatpush3.bf16.msra.mxu0 %v779_v7 }
   0x8   :  { %719 = vmatprep.subr.bf16.mxu0 %v780_v8  ;;  %750 = vmatprep.subr.bf16.mxu1 %v780_v8 }
   0xa   :  { %758 = vmatpush3.bf16.msra.mxu1 %v780_v8 }
   0xb   :  { %720 = vmatpush3.bf16.msra.mxu0 %v780_v8 }
   0xe   :  { %706 = vmatmul.mubr.msk.bf16.gmra.mrb[4].mxu0 %vm82_vm1, %v774_v5 }
   0xf   :  { %709 = vmatprep.mubr.msk.bf16.mxu0 %vm82_vm1, %v775_v6 }
  0x10   :  { %11 = vsyncpa [#allocation3], 0  ;;  %v776_v10 = vld [vmem:[%s1060_s0 + $0x28] sm:$0xff]   ;;  %721 = vmatprep.subr.bf16.mxu0 %v781_v9  ;;  %v782_v11 = vld [vmem:[%s1062_s2 + $0x18] sm:$0xff]   ;;  %751 = vmatprep.subr.bf16.mxu1 %v781_v9  ;;  %vm449_vm2 = vcmask 7168   ;;  %s811_s1 = smov 127  }
  0x11   :  { %v777_v12 = vld [vmem:[%s1060_s0 + $0x30] sm:$0xff]   ;;  %722 = vmatpush3.bf16.msra.mxu0 %v781_v9  ;;  %759 = vmatpush3.bf16.msra.mxu1 %v781_v9  ;;  %v783_v13 = vld [vmem:[%s1062_s2 + $0x20] sm:$0xff]   ;;  %v778_v14 = vld [vmem:[%s1060_s0 + $0x38] sm:$0xff]   ;;  %s812_s17 = smov [#allocation2]  }
  0x12   :  { %723 = vmatprep.subr.bf16.mxu0 %v782_v11  ;;  %752 = vmatprep.subr.bf16.mxu1 %v782_v11  ;;  %v784_v15 = vld [vmem:[%s1062_s2 + $0x28] sm:$0xff]   ;;  %v785_v16 = vld [vmem:[%s1062_s2 + $0x30] sm:$0xff]   ;;  %v786_v17 = vld [vmem:[%s1062_s2 + $0x38] sm:$0xff]   ;;  %s551_s18 = sshll.u32 %s812_s17, 4  ;;  %s552_s18 = int_to_ptr.vmem [resolvable:$true] %s551_s18 }
  0x13   :  { %s787_s24 = scalar_lea.vmem %s552_s18, 1024  ;;  %p792_p1 = scmp.lt.s32.totalorder %s552_s18, %s552_s18 }
  0x14   :  { %p788_p0 = scmp.ne.s32.totalorder %s552_s18, %s787_s24  ;;  %p793_p2 = scmp.lt.s32.totalorder %s787_s24, %s787_s24 }
  0x15   :  { %724 = vmatpush3.bf16.msra.mxu0 %v782_v11  ;;  %760 = vmatpush3.bf16.msra.mxu1 %v782_v11 }
  0x16   :  { %710 = vmatmul.mubr.msk.bf16.gmra.mrb[8].mxu0 %vm82_vm1, %v776_v10  ;;  %725 = vmatprep.subr.bf16.mxu0 %v783_v13  ;;  %p794_p3 = por %p793_p2, %p792_p1 }
  0x17   :  { %713 = vmatprep.mubr.msk.bf16.mxu0 %vm82_vm1, %v777_v12  ;;  %753 = vmatprep.subr.bf16.mxu1 %v783_v13 }
  0x18   :  { %p795_p4 = pnand %p794_p3, %p788_p0 }
  0x19   :  { %726 = vmatpush3.bf16.msra.mxu0 %v783_v13  ;;  %761 = vmatpush3.bf16.msra.mxu1 %v783_v13 }
  0x1a   :  { %727 = vmatprep.subr.bf16.mxu0 %v784_v15  ;;  %754 = vmatprep.subr.bf16.mxu1 %v784_v15 }
  0x1d   :  { %728 = vmatpush3.bf16.msra.mxu0 %v784_v15  ;;  %762 = vmatpush3.bf16.msra.mxu1 %v784_v15 }
  0x1e   :  { %714 = vmatmul.mubr.msk.bf16.gmra.mrb[12].mxu0 %vm82_vm1, %v778_v14  ;;  %729 = vmatprep.subr.bf16.mxu0 %v785_v16 }
  0x1f   :  { %755 = vmatprep.subr.bf16.mxu1 %v785_v16 }
  0x21   :  { %730 = vmatpush3.bf16.msra.mxu0 %v785_v16  ;;  %763 = vmatpush3.bf16.msra.mxu1 %v785_v16 }
  0x22   :  { %731 = vmatprep.subr.bf16.mxu0 %v786_v17  ;;  %756 = vmatprep.subr.bf16.mxu1 %v786_v17 }
  0x25   :  { %732 = vmatpush3.bf16.msra.mxu0 %v786_v17  ;;  %764 = vmatpush3.bf16.msra.mxu1 %v786_v17 }
  0xd9   :  { %v703_v18 = vpop.f32.mrb[0].mxu0 }
  0xda   :  { %v145_v19 = vpop.f32.mrb[1].mxu0 }
  0xdb   :  { %v704_v20 = vpop.f32.mrb[2].mxu0 }
  0xdc   :  { %v209_v21 = vpack.c.bf16 %v704_v20, %v703_v18  ;;  %v148_v22 = vpop.f32.mrb[3].mxu0 }
  0xdd   :  { %v208_v23 = vpack.c.bf16 %v148_v22, %v145_v19 }
  0xde   :  { %667 = vst [vmem:[#allocation2 + $0x8] sm:$0xff] %v209_v21  }
  0xdf   :  { %631 = vst [vmem:[#allocation2] sm:$0xff] %v208_v23   ;;  %733 = vmatprep.mubr.bf16.mxu0 %v208_v23 }
  0xe0   :  { %734 = vmatmul.mubr.bf16.vlgmr.msra.gmra.mrb[16].mxu0 %v209_v21 }
  0xe1   :  { %v707_v24 = vpop.f32.mrb[4].mxu0 }
  0xe2   :  { %v161_v25 = vpop.f32.mrb[5].mxu0 }
  0xe3   :  { %v708_v26 = vpop.f32.mrb[6].mxu0 }
  0xe4   :  { %v211_v27 = vpack.c.bf16 %v708_v26, %v707_v24  ;;  %v164_v28 = vpop.f32.mrb[7].mxu0 }
  0xe5   :  { %v210_v29 = vpack.c.bf16 %v164_v28, %v161_v25 }
  0xe6   :  { %669 = vst [vmem:[#allocation2 + $0x18] sm:$0xff] %v211_v27  }
  0xe7   :  { %668 = vst [vmem:[#allocation2 + $0x10] sm:$0xff] %v210_v29   ;;  %737 = vmatprep.mubr.bf16.mxu1 %v210_v29 }
  0xe8   :  { %738 = vmatmul.mubr.bf16.vlgmr.msra.gmra.mrb[0].mxu1 %v211_v27 }
  0xe9   :  { %v711_v30 = vpop.f32.mrb[8].mxu0 }
  0xea   :  { %v177_v31 = vpop.f32.mrb[9].mxu0 }
  0xeb   :  { %v712_v32 = vpop.f32.mrb[10].mxu0 }
  0xec   :  { %v213_v33 = vpack.c.bf16 %v712_v32, %v711_v30  ;;  %v180_v34 = vpop.f32.mrb[11].mxu0 }
  0xed   :  { %v212_v35 = vpack.c.bf16 %v180_v34, %v177_v31 }
  0xee   :  { %671 = vst [vmem:[#allocation2 + $0x28] sm:$0xff] %v213_v33  }
  0xef   :  { %670 = vst [vmem:[#allocation2 + $0x20] sm:$0xff] %v212_v35   ;;  %741 = vmatprep.mubr.bf16.mxu1 %v212_v35 }
  0xf0   :  { %742 = vmatmul.mubr.bf16.gmra.mrb[4].mxu1 %v213_v33 }
  0xf1   :  { %v715_v36 = vpop.f32.mrb[12].mxu0 }
  0xf2   :  { %v193_v37 = vpop.f32.mrb[13].mxu0 }
  0xf3   :  { %v716_v38 = vpop.f32.mrb[14].mxu0 }
  0xf4   :  { %v215_v39 = vpack.c.bf16 %v716_v38, %v715_v36  ;;  %v196_v40 = vpop.f32.mrb[15].mxu0 }
  0xf5   :  { %v214_v41 = vpack.c.bf16 %v196_v40, %v193_v37 }
  0xf6   :  { %673 = vst [vmem:[#allocation2 + $0x38] sm:$0xff] %v215_v39  }
  0xf7   :  { %672 = vst [vmem:[#allocation2 + $0x30] sm:$0xff] %v214_v41   ;;  %745 = vmatprep.mubr.bf16.mxu1 %v214_v41 }
  0xf8   :  { %746 = vmatmul.mubr.bf16.gmra.mrb[8].mxu1 %v215_v39 }
 0x1b3   :  { %v735_v42 = vpop.f32.mrb[16].mxu0 }
 0x1b4   :  { %452 = vst.msk [vmem:[%s1064_s4 + $0x10] sm:$0xff] %vm449_vm2, %v735_v42  ;;  %486 = vrot.lane.b32.xlu1 %v735_v42, %s811_s1  ;;  %v386_v43 = vpop.f32.mrb[17].mxu0 }
 0x1b5   :  { %450 = vst.msk [vmem:[%s1064_s4] sm:$0xff] %vm449_vm2, %v386_v43  ;;  %482 = vrot.lane.b32.xlu0 %v386_v43, %s811_s1  ;;  %v736_v44 = vpop.f32.mrb[18].mxu0 }
 0x1b6   :  { %453 = vst.msk [vmem:[%s1064_s4 + $0x18] sm:$0xff] %vm449_vm2, %v736_v44  ;;  %v389_v45 = vpop.f32.mrb[19].mxu0 }
 0x1b7   :  { %451 = vst.msk [vmem:[%s1064_s4 + $0x8] sm:$0xff] %vm449_vm2, %v389_v45 }
 0x1b8   :  { %488 = vrot.lane.b32.xlu1 %v736_v44, %s811_s1 }
 0x1b9   :  { %484 = vrot.lane.b32.xlu0 %v389_v45, %s811_s1 }
 0x1bb   :  { %v739_v46 = vpop.f32.mrb[0].mxu1 }
 0x1bc   :  { %456 = vst.msk [vmem:[%s1064_s4 + $0x30] sm:$0xff] %vm449_vm2, %v739_v46  ;;  %v402_v47 = vpop.f32.mrb[1].mxu1 }
 0x1bd   :  { %454 = vst.msk [vmem:[%s1064_s4 + $0x20] sm:$0xff] %vm449_vm2, %v402_v47  ;;  %v740_v48 = vpop.f32.mrb[2].mxu1  ;;  %494 = vrot.lane.b32.xlu0 %v739_v46, %s811_s1 }
 0x1be   :  { %457 = vst.msk [vmem:[%s1064_s4 + $0x38] sm:$0xff] %vm449_vm2, %v740_v48  ;;  %v405_v49 = vpop.f32.mrb[3].mxu1  ;;  %496 = vrot.lane.b32.xlu1 %v740_v48, %s811_s1 }
 0x1bf   :  { %455 = vst.msk [vmem:[%s1064_s4 + $0x28] sm:$0xff] %vm449_vm2, %v405_v49 }
 0x1c1   :  { %490 = vrot.lane.b32.xlu0 %v402_v47, %s811_s1 }
 0x1c2   :  { %492 = vrot.lane.b32.xlu1 %v405_v49, %s811_s1 }
 0x1c3   :  { %v743_v50 = vpop.f32.mrb[4].mxu1 }
 0x1c4   :  { %460 = vst.msk [vmem:[%s1064_s4 + $0x50] sm:$0xff] %vm449_vm2, %v743_v50  ;;  %v418_v51 = vpop.f32.mrb[5].mxu1 }
 0x1c5   :  { %458 = vst.msk [vmem:[%s1064_s4 + $0x40] sm:$0xff] %vm449_vm2, %v418_v51  ;;  %v744_v52 = vpop.f32.mrb[6].mxu1  ;;  %502 = vrot.lane.b32.xlu0 %v743_v50, %s811_s1 }
 0x1c6   :  { %461 = vst.msk [vmem:[%s1064_s4 + $0x58] sm:$0xff] %vm449_vm2, %v744_v52  ;;  %v421_v53 = vpop.f32.mrb[7].mxu1  ;;  %504 = vrot.lane.b32.xlu1 %v744_v52, %s811_s1 }
 0x1c7   :  { %459 = vst.msk [vmem:[%s1064_s4 + $0x48] sm:$0xff] %vm449_vm2, %v421_v53 }
 0x1c8   :  { %798 = shalt.err (!%p795_p4)
}
 0x1c9   :  { %s799_s26 = scalar_lea.hbm %s1063_s3, 1024 }
 0x1ca   :  { %p800_p5 = scmp.ne.s32.totalorder %s1063_s3, %s799_s26  ;;  %p803_p6 = scmp.lt.u32.totalorder %s799_s26, %s1063_s3 }
 0x1cc   :  { %p805_p7 = pnand %p803_p6, %p800_p5 }
 0x1ce   :  { %808 = shalt.err (!%p805_p7)
}
 0x1cf   :  { %s813_s6 = smov 64   ;;  %s814_s7 = smov 4   ;;  %498 = vrot.lane.b32.xlu0 %v418_v51, %s811_s1  ;;  %500 = vrot.lane.b32.xlu1 %v421_v53, %s811_s1  ;;  %v747_v54 = vpop.f32.mrb[8].mxu1 }
 0x1d0   :  { %557 = dma.vmem_to_hbm [thread:$0]  %s552_s18, 1024, %s1063_s3, [#allocation3], %s813_s6, %s813_s6, %s814_s7   ;;  %v434_v55 = vpop.f32.mrb[9].mxu1 }
 0x1d1   :  { %464 = vst.msk [vmem:[%s1064_s4 + $0x70] sm:$0xff] %vm449_vm2, %v747_v54  ;;  %462 = vst.msk [vmem:[%s1064_s4 + $0x60] sm:$0xff] %vm449_vm2, %v434_v55  ;;  %v748_v56 = vpop.f32.mrb[10].mxu1 }
 0x1d2   :  { %465 = vst.msk [vmem:[%s1064_s4 + $0x78] sm:$0xff] %vm449_vm2, %v748_v56  ;;  %v437_v57 = vpop.f32.mrb[11].mxu1 }
 0x1d3   :  { %506 = vrot.lane.b32.xlu0 %v434_v55, %s811_s1  ;;  %463 = vst.msk [vmem:[%s1064_s4 + $0x68] sm:$0xff] %vm449_vm2, %v437_v57  ;;  %508 = vrot.lane.b32.xlu1 %v437_v57, %s811_s1 }
 0x1d7   :  { %510 = vrot.lane.b32.xlu0 %v747_v54, %s811_s1  ;;  %512 = vrot.lane.b32.xlu1 %v748_v56, %s811_s1 }
 0x226   :  { %v487_v58 = vpop.permute.xlu1 %486 }
 0x227   :  { %532 = vst.msk [vmem:[%s1065_s5 + $0x10] sm:$0xff] %vm449_vm2, %v487_v58  ;;  %v483_v59 = vpop.permute.xlu0 %482 }
 0x228   :  { %530 = vst.msk [vmem:[%s1065_s5] sm:$0xff] %vm449_vm2, %v483_v59 }
 0x22a   :  { %v489_v60 = vpop.permute.xlu1 %488 }
 0x22b   :  { %533 = vst.msk [vmem:[%s1065_s5 + $0x18] sm:$0xff] %vm449_vm2, %v489_v60  ;;  %v485_v61 = vpop.permute.xlu0 %484 }
 0x22c   :  { %531 = vst.msk [vmem:[%s1065_s5 + $0x8] sm:$0xff] %vm449_vm2, %v485_v61 }
 0x22f   :  { %v495_v62 = vpop.permute.xlu0 %494 }
 0x230   :  { %536 = vst.msk [vmem:[%s1065_s5 + $0x30] sm:$0xff] %vm449_vm2, %v495_v62  ;;  %v497_v63 = vpop.permute.xlu1 %496 }
 0x231   :  { %537 = vst.msk [vmem:[%s1065_s5 + $0x38] sm:$0xff] %vm449_vm2, %v497_v63 }
 0x233   :  { %v491_v0 = vpop.permute.xlu0 %490 }
 0x234   :  { %534 = vst.msk [vmem:[%s1065_s5 + $0x20] sm:$0xff] %vm449_vm2, %v491_v0  ;;  %v493_v1 = vpop.permute.xlu1 %492 }
 0x235   :  { %535 = vst.msk [vmem:[%s1065_s5 + $0x28] sm:$0xff] %vm449_vm2, %v493_v1 }
 0x237   :  { %v503_v2 = vpop.permute.xlu0 %502 }
 0x238   :  { %540 = vst.msk [vmem:[%s1065_s5 + $0x50] sm:$0xff] %vm449_vm2, %v503_v2  ;;  %v505_v3 = vpop.permute.xlu1 %504 }
 0x239   :  { %541 = vst.msk [vmem:[%s1065_s5 + $0x58] sm:$0xff] %vm449_vm2, %v505_v3 }
 0x241   :  { %v499_v4 = vpop.permute.xlu0 %498  ;;  %v501_v5 = vpop.permute.xlu1 %500 }
 0x242   :  { %538 = vst.msk [vmem:[%s1065_s5 + $0x40] sm:$0xff] %vm449_vm2, %v499_v4  ;;  %539 = vst.msk [vmem:[%s1065_s5 + $0x48] sm:$0xff] %vm449_vm2, %v501_v5 }
 0x245   :  { %v507_v6 = vpop.permute.xlu0 %506  ;;  %v509_v7 = vpop.permute.xlu1 %508 }
 0x246   :  { %542 = vst.msk [vmem:[%s1065_s5 + $0x60] sm:$0xff] %vm449_vm2, %v507_v6  ;;  %543 = vst.msk [vmem:[%s1065_s5 + $0x68] sm:$0xff] %vm449_vm2, %v509_v7 }
 0x249   :  { %v511_v8 = vpop.permute.xlu0 %510  ;;  %v513_v9 = vpop.permute.xlu1 %512 }
 0x24a   :  { %544 = vst.msk [vmem:[%s1065_s5 + $0x70] sm:$0xff] %vm449_vm2, %v511_v8  ;;  %545 = vst.msk [vmem:[%s1065_s5 + $0x78] sm:$0xff] %vm449_vm2, %v513_v9 }
 0x24b   :  { %809 = dma.done.wait [#allocation3], 1024  }
 0x24c   :  { %810 = vsyncadd [#allocation3], 4294966272 }
 0x24d   :  { %569 = vsyncpa [#allocation3], 1 }

</bundles_post_ra>
